<compile_context>
chip_gen: v5e
topology: v5e:2x2
jax: 0.10.0
libtpu: 0.0.40
codegen_flags: <defaults>
</compile_context>

<pallas_src>
import jax
import jax.numpy as jnp
from jax.experimental import pallas as pl
from jax.experimental.pallas import tpu as pltpu

_EPS = 1e-5  # torch.nn.LayerNorm default eps


def _merge_ln_reduce_kernel(xe_ref, xo_ref, w_ref, b_ref, o_ref):
    """LayerNorm(4C) + Linear(4C -> Cout) on 2x2-merged patches.

    xe_ref: (th, Wh, 2C)  even input rows -> channels [x0 | x2]
    xo_ref: (th, Wh, 2C)  odd  input rows -> channels [x1 | x3]
    w_ref:  (4C, Cout)    gamma-scaled, row-permuted reduction weight
    b_ref:  (1,  Cout)    beta @ W^T (folded LayerNorm bias)
    o_ref:  (th, Wh, Cout)
    """
    # Merged token channels (order [x0 | x2 | x1 | x3]); LN stats in f32.
    z = jnp.concatenate([xe_ref[...], xo_ref[...]], axis=-1).astype(jnp.float32)
    mean = jnp.mean(z, axis=-1, keepdims=True)
    zc = z - mean
    var = jnp.mean(zc * zc, axis=-1, keepdims=True)  # biased, matches torch LN
    zn = (zc * jax.lax.rsqrt(var + _EPS)).astype(w_ref.dtype)

    w = w_ref[...]
    th, wh, cout = o_ref.shape
    bias = jnp.broadcast_to(b_ref[...].astype(jnp.float32), (th, cout))  # hoisted

    # Static unroll over the Wh axis keeps every MXU dot strictly 2-D.
    for j in range(wh):
        acc = jnp.dot(zn[:, j, :], w, preferred_element_type=jnp.float32)
        o_ref[:, j, :] = (acc + bias).astype(o_ref.dtype)


def _choose_row_tile(R, Wh, c4, cout, in_itemsize, out_itemsize,
                     target_tokens=1024, vmem_budget_bytes=8 * 1024 * 1024):
    """Pick a divisor of R: multi-step grid, ~<=1024 tokens/step, VMEM-safe."""
    def block_bytes(th):
        tokens = th * Wh
        # 2 input streams (together tokens*4C) + output block, double buffered.
        return 2 * tokens * (c4 * in_itemsize + cout * out_itemsize)

    divisors = [d for d in range(1, R + 1) if R % d == 0]
    feasible = [d for d in divisors if block_bytes(d) <= vmem_budget_bytes] or [1]
    multi_step = [d for d in feasible if R // d >= 2] or feasible
    within = [d for d in multi_step if d * Wh <= target_tokens]
    return max(within) if within else min(multi_step)


def patch_merging_forward(x, H, W, gamma, beta, weight, *, row_tile=None):
    """x: (B, L, C), L == H*W.  weight: (2C, 4C) torch-style.  -> (B, ceil(H/2)*ceil(W/2), 2C)."""
    B, L, C = x.shape
    assert L == H * W, "input feature has wrong size"
    assert weight.shape[1] == 4 * C

    xv = x.reshape(B, H, W, C)
    if (H % 2) or (W % 2):                      # same padding as F.pad in torch
        xv = jnp.pad(xv, ((0, 0), (0, H % 2), (0, W % 2), (0, 0)))
        H, W = H + H % 2, W + W % 2
    Hh, Wh = H // 2, W // 2
    R = B * Hh                                   # half-row strips
    M = R * Wh                                   # merged tokens
    c4 = 4 * C
    cout = weight.shape[0]                       # 2C

    # Free reshape: row parity on axis 1, column parity folded into channels.
    # x8[r, rp, ww, cp*C + c] == x[b, 2*hh+rp, 2*ww+cp, c]  with r = b*Hh + hh.
    x8 = xv.reshape(R, 2, Wh, 2 * C)

    # Fold LN affine into the reduction weight/bias; permute weight rows to the
    # kernel's [x0 | x2 | x1 | x3] channel order.
    w_t = weight.astype(jnp.float32).T                               # (4C, Cout)
    w_g = gamma.astype(jnp.float32)[:, None] * w_t
    w_f = jnp.concatenate(
        [w_g[0:C], w_g[2 * C:3 * C], w_g[C:2 * C], w_g[3 * C:4 * C]], axis=0)
    bias = (beta.astype(jnp.float32) @ w_t).reshape(1, cout)         # f32

    mm_dtype = jnp.bfloat16 if x.dtype == jnp.bfloat16 else jnp.float32
    w_f = w_f.astype(mm_dtype)

    itemsize = jnp.dtype(x.dtype).itemsize
    th = row_tile if row_tile is not None else _choose_row_tile(
        R, Wh, c4, cout, itemsize, itemsize)
    assert R % th == 0, "row_tile must divide B * (H // 2)"

    cost = pl.CostEstimate(
        flops=2 * M * c4 * cout + 10 * M * c4,
        transcendentals=M,
        bytes_accessed=(M * c4 + M * cout) * itemsize
        + c4 * cout * jnp.dtype(mm_dtype).itemsize,
    )

    out = pl.pallas_call(
        _merge_ln_reduce_kernel,
        out_shape=jax.ShapeDtypeStruct((R, Wh, cout), x.dtype),
        grid_spec=pltpu.PrefetchScalarGridSpec(
            num_scalar_prefetch=0,
            grid=(R // th,),
            in_specs=[
                # even rows stream: x8[:, 0, :, :]
                pl.BlockSpec((th, None, Wh, 2 * C), lambda i: (i, 0, 0, 0)),
                # odd rows stream:  x8[:, 1, :, :]
                pl.BlockSpec((th, None, Wh, 2 * C), lambda i: (i, 1, 0, 0)),
                pl.BlockSpec((c4, cout), lambda i: (0, 0)),
                pl.BlockSpec((1, cout), lambda i: (0, 0)),
            ],
            out_specs=pl.BlockSpec((th, Wh, cout), lambda i: (i, 0, 0)),
        ),
        compiler_params=pltpu.CompilerParams(
            dimension_semantics=("parallel",),
            vmem_limit_bytes=32 * 1024 * 1024,
        ),
        cost_estimate=cost,
    )(x8, x8, w_f, bias)

    return out.reshape(B, Hh * Wh, cout)


def _reference(x, H, W, gamma, beta, weight):
    """Pure-JAX mirror of the torch PatchMerging forward (f32)."""
    B, L, C = x.shape
    xv = x.astype(jnp.float32).reshape(B, H, W, C)
    if (H % 2) or (W % 2):
        xv = jnp.pad(xv, ((0, 0), (0, H % 2), (0, W % 2), (0, 0)))
    x0 = xv[:, 0::2, 0::2, :]
    x1 = xv[:, 1::2, 0::2, :]
    x2 = xv[:, 0::2, 1::2, :]
    x3 = xv[:, 1::2, 1::2, :]
    xc = jnp.concatenate([x0, x1, x2, x3], axis=-1).reshape(B, -1, 4 * C)
    mean = jnp.mean(xc, axis=-1, keepdims=True)
    var = jnp.mean((xc - mean) ** 2, axis=-1, keepdims=True)
    y = (xc - mean) * jax.lax.rsqrt(var + _EPS) * gamma + beta
    return y @ weight.astype(jnp.float32).T


if __name__ == "__main__":
    # Small shapes consistent with the module: dim=C=32, B=2, H=W=16 (L=256).
    B, H, W, dim = 2, 16, 16, 32
    L = H * W

    key = jax.random.PRNGKey(0)
    kx, kw, kg, kb = jax.random.split(key, 4)
    x = jax.random.normal(kx, (B, L, dim), dtype=jnp.float32)
    weight = jax.random.normal(kw, (2 * dim, 4 * dim), dtype=jnp.float32) * 0.02
    gamma = 1.0 + 0.1 * jax.random.normal(kg, (4 * dim,), dtype=jnp.float32)
    beta = 0.05 * jax.random.normal(kb, (4 * dim,), dtype=jnp.float32)

    ref = _reference(x, H, W, gamma, beta, weight)

    # f32 path (exact-ish): tight tolerance vs the pure-JAX reference.
    out = patch_merging_forward(x, H, W, gamma, beta, weight)
    out = jax.block_until_ready(out)
    assert out.shape == (B, (H // 2) * (W // 2), 2 * dim)
    assert out.dtype == x.dtype
    err = float(jnp.max(jnp.abs(out - ref)))
    assert jnp.allclose(out, ref, atol=1e-4, rtol=1e-4), f"f32 max err {err}"

    # bf16 I/O + bf16 MXU operands (fast path on v6e/v7x): loose tolerance.
    out_bf16 = patch_merging_forward(x.astype(jnp.bfloat16), H, W, gamma, beta, weight)
    out_bf16 = jax.block_until_ready(out_bf16)
    assert out_bf16.dtype == jnp.bfloat16
    assert jnp.allclose(out_bf16.astype(jnp.float32), ref, atol=5e-2, rtol=5e-2)

    print("KERNEL_OK")
</pallas_src>

<mosaic_0001>
module attributes {stable_mosaic.version = 11 : i64} {
  func.func @_merge_ln_reduce_kernel(%arg0: i32, %arg1: memref<8x1x8x64xf32, #tpu.memory_space<vmem>>, %arg2: memref<8x1x8x64xf32, #tpu.memory_space<vmem>>, %arg3: memref<128x64xf32, #tpu.memory_space<vmem>>, %arg4: memref<1x64xf32, #tpu.memory_space<vmem>>, %arg5: memref<8x8x64xf32, #tpu.memory_space<vmem>>) attributes {dimension_semantics = [#tpu.dimension_semantics<parallel>], iteration_bounds = array<i64: 2>, scalar_prefetch = 0 : i64, scratch_operands = 0 : i64, tpu.core_type = #tpu.core_type<tc>, window_params = [{transform_indices = @transform_0, window_bounds = array<i64: 8, 1, 8, 64>}, {transform_indices = @transform_1, window_bounds = array<i64: 8, 1, 8, 64>}, {pipeline_mode = #tpu.pipeline_mode<synchronous>, transform_indices = @transform_2, window_bounds = array<i64: 128, 64>}, {pipeline_mode = #tpu.pipeline_mode<synchronous>, transform_indices = @transform_3, window_bounds = array<i64: 1, 64>}, {transform_indices = @transform_4, window_bounds = array<i64: 8, 8, 64>}]} {
    %c0 = arith.constant 0 : index
    %c0_0 = arith.constant 0 : index
    %c0_1 = arith.constant 0 : index
    %c0_2 = arith.constant 0 : index
    %0 = vector.load %arg1[%c0, %c0_0, %c0_1, %c0_2] : memref<8x1x8x64xf32, #tpu.memory_space<vmem>>, vector<8x1x8x64xf32>
    %1 = vector.shape_cast %0 : vector<8x1x8x64xf32> to vector<8x8x64xf32>
    %c0_3 = arith.constant 0 : index
    %c0_4 = arith.constant 0 : index
    %c0_5 = arith.constant 0 : index
    %c0_6 = arith.constant 0 : index
    %2 = vector.load %arg2[%c0_3, %c0_4, %c0_5, %c0_6] : memref<8x1x8x64xf32, #tpu.memory_space<vmem>>, vector<8x1x8x64xf32>
    %3 = vector.shape_cast %2 : vector<8x1x8x64xf32> to vector<8x8x64xf32>
    %4 = tpu.concatenate %1, %3 in 2 : vector<8x8x64xf32>, vector<8x8x64xf32> -> vector<8x8x128xf32>
    %cst = arith.constant dense<0.000000e+00> : vector<8x8xf32>
    %5 = vector.multi_reduction <add>, %4, %cst [2] : vector<8x8x128xf32> to vector<8x8xf32>
    %6 = vector.shape_cast %5 : vector<8x8xf32> to vector<8x8x1xf32>
    %cst_7 = arith.constant 1.280000e+02 : f32
    %7 = vector.broadcast %cst_7 : f32 to vector<8x8x1xf32>
    %8 = arith.divf %6, %7 : vector<8x8x1xf32>
    %9 = vector.broadcast %8 : vector<8x8x1xf32> to vector<8x8x128xf32>
    %10 = arith.subf %4, %9 : vector<8x8x128xf32>
    %11 = arith.mulf %10, %10 : vector<8x8x128xf32>
    %cst_8 = arith.constant dense<0.000000e+00> : vector<8x8xf32>
    %12 = vector.multi_reduction <add>, %11, %cst_8 [2] : vector<8x8x128xf32> to vector<8x8xf32>
    %13 = vector.shape_cast %12 : vector<8x8xf32> to vector<8x8x1xf32>
    %cst_9 = arith.constant 1.280000e+02 : f32
    %14 = vector.broadcast %cst_9 : f32 to vector<8x8x1xf32>
    %15 = arith.divf %13, %14 : vector<8x8x1xf32>
    %cst_10 = arith.constant 9.99999974E-6 : f32
    %16 = vector.broadcast %cst_10 : f32 to vector<8x8x1xf32>
    %17 = arith.addf %15, %16 : vector<8x8x1xf32>
    %18 = math.rsqrt %17 : vector<8x8x1xf32>
    %19 = vector.broadcast %18 : vector<8x8x1xf32> to vector<8x8x128xf32>
    %20 = arith.mulf %10, %19 : vector<8x8x128xf32>
    %c0_11 = arith.constant 0 : index
    %c0_12 = arith.constant 0 : index
    %21 = vector.load %arg3[%c0_11, %c0_12] : memref<128x64xf32, #tpu.memory_space<vmem>>, vector<128x64xf32>
    %c0_13 = arith.constant 0 : index
    %c0_14 = arith.constant 0 : index
    %22 = vector.load %arg4[%c0_13, %c0_14] : memref<1x64xf32, #tpu.memory_space<vmem>>, vector<1x64xf32>
    %23 = vector.shape_cast %22 : vector<1x64xf32> to vector<1x64xf32>
    %24 = vector.broadcast %23 : vector<1x64xf32> to vector<8x64xf32>
    %25 = vector.extract_strided_slice %20 {offsets = [0, 0, 0], sizes = [8, 1, 128], strides = [1, 1, 1]} : vector<8x8x128xf32> to vector<8x1x128xf32>
    %26 = vector.shape_cast %25 : vector<8x1x128xf32> to vector<8x128xf32>
    %cst_15 = arith.constant dense<0.000000e+00> : vector<8x64xf32>
    %27 = tpu.matmul %26, %21, %cst_15 {dimension_numbers = #tpu.dot_dimension_numbers<[1], [0], [0], [1], [0, 0, 1, 1], [], []>} : vector<8x128xf32>, vector<128x64xf32>, vector<8x64xf32> -> vector<8x64xf32>
    %28 = arith.addf %27, %24 : vector<8x64xf32>
    %c0_16 = arith.constant 0 : index
    %c0_17 = arith.constant 0 : index
    %c0_18 = arith.constant 0 : index
    %29 = vector.load %arg5[%c0_16, %c0_17, %c0_18] : memref<8x8x64xf32, #tpu.memory_space<vmem>>, vector<8x1x64xf32>
    %30 = vector.shape_cast %29 : vector<8x1x64xf32> to vector<8x64xf32>
    %31 = vector.shape_cast %28 : vector<8x64xf32> to vector<8x1x64xf32>
    tpu.vector_store %arg5[%c0_16, %c0_17, %c0_18], %31 {strides = array<i32>} : memref<8x8x64xf32, #tpu.memory_space<vmem>>, vector<8x1x64xf32>,
    %32 = vector.extract_strided_slice %20 {offsets = [0, 1, 0], sizes = [8, 1, 128], strides = [1, 1, 1]} : vector<8x8x128xf32> to vector<8x1x128xf32>
    %33 = vector.shape_cast %32 : vector<8x1x128xf32> to vector<8x128xf32>
    %cst_19 = arith.constant dense<0.000000e+00> : vector<8x64xf32>
    %34 = tpu.matmul %33, %21, %cst_19 {dimension_numbers = #tpu.dot_dimension_numbers<[1], [0], [0], [1], [0, 0, 1, 1], [], []>} : vector<8x128xf32>, vector<128x64xf32>, vector<8x64xf32> -> vector<8x64xf32>
    %35 = arith.addf %34, %24 : vector<8x64xf32>
    %c0_20 = arith.constant 0 : index
    %c1 = arith.constant 1 : index
    %c0_21 = arith.constant 0 : index
    %36 = vector.load %arg5[%c0_20, %c1, %c0_21] : memref<8x8x64xf32, #tpu.memory_space<vmem>>, vector<8x1x64xf32>
    %37 = vector.shape_cast %36 : vector<8x1x64xf32> to vector<8x64xf32>
    %38 = vector.shape_cast %35 : vector<8x64xf32> to vector<8x1x64xf32>
    tpu.vector_store %arg5[%c0_20, %c1, %c0_21], %38 {strides = array<i32>} : memref<8x8x64xf32, #tpu.memory_space<vmem>>, vector<8x1x64xf32>,
    %39 = vector.extract_strided_slice %20 {offsets = [0, 2, 0], sizes = [8, 1, 128], strides = [1, 1, 1]} : vector<8x8x128xf32> to vector<8x1x128xf32>
    %40 = vector.shape_cast %39 : vector<8x1x128xf32> to vector<8x128xf32>
    %cst_22 = arith.constant dense<0.000000e+00> : vector<8x64xf32>
    %41 = tpu.matmul %40, %21, %cst_22 {dimension_numbers = #tpu.dot_dimension_numbers<[1], [0], [0], [1], [0, 0, 1, 1], [], []>} : vector<8x128xf32>, vector<128x64xf32>, vector<8x64xf32> -> vector<8x64xf32>
    %42 = arith.addf %41, %24 : vector<8x64xf32>
    %c0_23 = arith.constant 0 : index
    %c2 = arith.constant 2 : index
    %c0_24 = arith.constant 0 : index
    %43 = vector.load %arg5[%c0_23, %c2, %c0_24] : memref<8x8x64xf32, #tpu.memory_space<vmem>>, vector<8x1x64xf32>
    %44 = vector.shape_cast %43 : vector<8x1x64xf32> to vector<8x64xf32>
    %45 = vector.shape_cast %42 : vector<8x64xf32> to vector<8x1x64xf32>
    tpu.vector_store %arg5[%c0_23, %c2, %c0_24], %45 {strides = array<i32>} : memref<8x8x64xf32, #tpu.memory_space<vmem>>, vector<8x1x64xf32>,
    %46 = vector.extract_strided_slice %20 {offsets = [0, 3, 0], sizes = [8, 1, 128], strides = [1, 1, 1]} : vector<8x8x128xf32> to vector<8x1x128xf32>
    %47 = vector.shape_cast %46 : vector<8x1x128xf32> to vector<8x128xf32>
    %cst_25 = arith.constant dense<0.000000e+00> : vector<8x64xf32>
    %48 = tpu.matmul %47, %21, %cst_25 {dimension_numbers = #tpu.dot_dimension_numbers<[1], [0], [0], [1], [0, 0, 1, 1], [], []>} : vector<8x128xf32>, vector<128x64xf32>, vector<8x64xf32> -> vector<8x64xf32>
    %49 = arith.addf %48, %24 : vector<8x64xf32>
    %c0_26 = arith.constant 0 : index
    %c3 = arith.constant 3 : index
    %c0_27 = arith.constant 0 : index
    %50 = vector.load %arg5[%c0_26, %c3, %c0_27] : memref<8x8x64xf32, #tpu.memory_space<vmem>>, vector<8x1x64xf32>
    %51 = vector.shape_cast %50 : vector<8x1x64xf32> to vector<8x64xf32>
    %52 = vector.shape_cast %49 : vector<8x64xf32> to vector<8x1x64xf32>
    tpu.vector_store %arg5[%c0_26, %c3, %c0_27], %52 {strides = array<i32>} : memref<8x8x64xf32, #tpu.memory_space<vmem>>, vector<8x1x64xf32>,
    %53 = vector.extract_strided_slice %20 {offsets = [0, 4, 0], sizes = [8, 1, 128], strides = [1, 1, 1]} : vector<8x8x128xf32> to vector<8x1x128xf32>
    %54 = vector.shape_cast %53 : vector<8x1x128xf32> to vector<8x128xf32>
    %cst_28 = arith.constant dense<0.000000e+00> : vector<8x64xf32>
    %55 = tpu.matmul %54, %21, %cst_28 {dimension_numbers = #tpu.dot_dimension_numbers<[1], [0], [0], [1], [0, 0, 1, 1], [], []>} : vector<8x128xf32>, vector<128x64xf32>, vector<8x64xf32> -> vector<8x64xf32>
    %56 = arith.addf %55, %24 : vector<8x64xf32>
    %c0_29 = arith.constant 0 : index
    %c4 = arith.constant 4 : index
    %c0_30 = arith.constant 0 : index
    %57 = vector.load %arg5[%c0_29, %c4, %c0_30] : memref<8x8x64xf32, #tpu.memory_space<vmem>>, vector<8x1x64xf32>
    %58 = vector.shape_cast %57 : vector<8x1x64xf32> to vector<8x64xf32>
    %59 = vector.shape_cast %56 : vector<8x64xf32> to vector<8x1x64xf32>
    tpu.vector_store %arg5[%c0_29, %c4, %c0_30], %59 {strides = array<i32>} : memref<8x8x64xf32, #tpu.memory_space<vmem>>, vector<8x1x64xf32>,
    %60 = vector.extract_strided_slice %20 {offsets = [0, 5, 0], sizes = [8, 1, 128], strides = [1, 1, 1]} : vector<8x8x128xf32> to vector<8x1x128xf32>
    %61 = vector.shape_cast %60 : vector<8x1x128xf32> to vector<8x128xf32>
    %cst_31 = arith.constant dense<0.000000e+00> : vector<8x64xf32>
    %62 = tpu.matmul %61, %21, %cst_31 {dimension_numbers = #tpu.dot_dimension_numbers<[1], [0], [0], [1], [0, 0, 1, 1], [], []>} : vector<8x128xf32>, vector<128x64xf32>, vector<8x64xf32> -> vector<8x64xf32>
    %63 = arith.addf %62, %24 : vector<8x64xf32>
    %c0_32 = arith.constant 0 : index
    %c5 = arith.constant 5 : index
    %c0_33 = arith.constant 0 : index
    %64 = vector.load %arg5[%c0_32, %c5, %c0_33] : memref<8x8x64xf32, #tpu.memory_space<vmem>>, vector<8x1x64xf32>
    %65 = vector.shape_cast %64 : vector<8x1x64xf32> to vector<8x64xf32>
    %66 = vector.shape_cast %63 : vector<8x64xf32> to vector<8x1x64xf32>
    tpu.vector_store %arg5[%c0_32, %c5, %c0_33], %66 {strides = array<i32>} : memref<8x8x64xf32, #tpu.memory_space<vmem>>, vector<8x1x64xf32>,
    %67 = vector.extract_strided_slice %20 {offsets = [0, 6, 0], sizes = [8, 1, 128], strides = [1, 1, 1]} : vector<8x8x128xf32> to vector<8x1x128xf32>
    %68 = vector.shape_cast %67 : vector<8x1x128xf32> to vector<8x128xf32>
    %cst_34 = arith.constant dense<0.000000e+00> : vector<8x64xf32>
    %69 = tpu.matmul %68, %21, %cst_34 {dimension_numbers = #tpu.dot_dimension_numbers<[1], [0], [0], [1], [0, 0, 1, 1], [], []>} : vector<8x128xf32>, vector<128x64xf32>, vector<8x64xf32> -> vector<8x64xf32>
    %70 = arith.addf %69, %24 : vector<8x64xf32>
    %c0_35 = arith.constant 0 : index
    %c6 = arith.constant 6 : index
    %c0_36 = arith.constant 0 : index
    %71 = vector.load %arg5[%c0_35, %c6, %c0_36] : memref<8x8x64xf32, #tpu.memory_space<vmem>>, vector<8x1x64xf32>
    %72 = vector.shape_cast %71 : vector<8x1x64xf32> to vector<8x64xf32>
    %73 = vector.shape_cast %70 : vector<8x64xf32> to vector<8x1x64xf32>
    tpu.vector_store %arg5[%c0_35, %c6, %c0_36], %73 {strides = array<i32>} : memref<8x8x64xf32, #tpu.memory_space<vmem>>, vector<8x1x64xf32>,
    %74 = vector.extract_strided_slice %20 {offsets = [0, 7, 0], sizes = [8, 1, 128], strides = [1, 1, 1]} : vector<8x8x128xf32> to vector<8x1x128xf32>
    %75 = vector.shape_cast %74 : vector<8x1x128xf32> to vector<8x128xf32>
    %cst_37 = arith.constant dense<0.000000e+00> : vector<8x64xf32>
    %76 = tpu.matmul %75, %21, %cst_37 {dimension_numbers = #tpu.dot_dimension_numbers<[1], [0], [0], [1], [0, 0, 1, 1], [], []>} : vector<8x128xf32>, vector<128x64xf32>, vector<8x64xf32> -> vector<8x64xf32>
    %77 = arith.addf %76, %24 : vector<8x64xf32>
    %c0_38 = arith.constant 0 : index
    %c7 = arith.constant 7 : index
    %c0_39 = arith.constant 0 : index
    %78 = vector.load %arg5[%c0_38, %c7, %c0_39] : memref<8x8x64xf32, #tpu.memory_space<vmem>>, vector<8x1x64xf32>
    %79 = vector.shape_cast %78 : vector<8x1x64xf32> to vector<8x64xf32>
    %80 = vector.shape_cast %77 : vector<8x64xf32> to vector<8x1x64xf32>
    tpu.vector_store %arg5[%c0_38, %c7, %c0_39], %80 {strides = array<i32>} : memref<8x8x64xf32, #tpu.memory_space<vmem>>, vector<8x1x64xf32>,
    return
  }
  func.func @transform_0(%arg0: i32) -> (i32, i32, i32, i32) {
    %c0_i32 = arith.constant 0 : i32
    %c0_i32_0 = arith.constant 0 : i32
    %c0_i32_1 = arith.constant 0 : i32
    %c0_i32_2 = arith.constant 0 : i32
    return %arg0, %c0_i32, %c0_i32_0, %c0_i32_1 : i32, i32, i32, i32
  }
  func.func @transform_1(%arg0: i32) -> (i32, i32, i32, i32) {
    %c1_i32 = arith.constant 1 : i32
    %c0_i32 = arith.constant 0 : i32
    %c0_i32_0 = arith.constant 0 : i32
    %c0_i32_1 = arith.constant 0 : i32
    return %arg0, %c1_i32, %c0_i32, %c0_i32_0 : i32, i32, i32, i32
  }
  func.func @transform_2(%arg0: i32) -> (i32, i32) {
    %c0_i32 = arith.constant 0 : i32
    %c0_i32_0 = arith.constant 0 : i32
    %c0_i32_1 = arith.constant 0 : i32
    return %c0_i32, %c0_i32_0 : i32, i32
  }
  func.func @transform_3(%arg0: i32) -> (i32, i32) {
    %c0_i32 = arith.constant 0 : i32
    %c0_i32_0 = arith.constant 0 : i32
    %c0_i32_1 = arith.constant 0 : i32
    return %c0_i32, %c0_i32_0 : i32, i32
  }
  func.func @transform_4(%arg0: i32) -> (i32, i32, i32) {
    %c0_i32 = arith.constant 0 : i32
    %c0_i32_0 = arith.constant 0 : i32
    %c0_i32_1 = arith.constant 0 : i32
    return %arg0, %c0_i32, %c0_i32_0 : i32, i32, i32
  }
}

</mosaic_0001>

<bundles_post_ra>
// kernel: tpu_custom_call.1
= control target key start
LH: loop header
LB: loop body
LE: loop exit
PB: predicated region body
PF: predicated region fallthrough
CT: control target
= control target key end

     0   :  { %s2245_s0 = inlined_call_operand.hbm [shape: f32[16,2,8,64], index: 0, kind: input, shape index: {}]   ;;  %s2246_s1 = inlined_call_operand.hbm [shape: f32[16,2,8,64], index: 1, kind: input, shape index: {}]   ;;  %s2247_s2 = inlined_call_operand.vmem [shape: f32[128,64], index: 2, kind: input, shape index: {}]   ;;  %s2248_s3 = inlined_call_operand.vmem [shape: f32[1,64], index: 3, kind: input, shape index: {}]   ;;  %s2249_s4 = inlined_call_operand.hbm [shape: f32[16,8,64], index: 4, kind: output, shape index: {}]  }
   0x1   :  { %2252 = sst [smem:[#allocation13_spill]] %s2245_s0 }
   0x2   :  { %9 = vsyncpa [#allocation3], 0 }
   0x3   :  { %11 = vsyncpa [#allocation3 + $0x1], 0 }
   0x4   :  { %12 = vsyncpa [#allocation6], 0 }
   0x5   :  { %14 = vsyncpa [#allocation6 + $0x1], 0 }
   0x6   :  { %15 = vsyncpa [#allocation4], 0 }
   0x7   :  { %17 = vsyncpa [#allocation4 + $0x1], 0  ;;  %s1368_s15 = smov 0   ;;  %s1370_s16 = smov 0  }
   0x8   :  { %s1372_s17 = smov 0   ;;  %s1374_s18 = smov 0  }
   0x9 LB: > { %2253 = sst [smem:[#allocation11_spill]] %s1330_s17  ;;  %s1389_s19 = sadd.s32 4294967295, %s1334_s18   ;;  %s1334_s18 = sphi %s1374_s18, %s2269_s18   ;;  %s1330_s17 = sphi %s1372_s17, %s2266_s17   ;;  %s1326_s16 = sphi %s1370_s16, %s2268_s16   ;;  %s1322_s15 = sphi %s1368_s15, %s2267_s15  }
   0xa   : > { %s1104_s20 = sadd.s32 4294967294, %s1334_s18   ;;  %s1393_s21 = sadd.s32 1, %s1334_s18  }
   0xb   : > { %s30_s22 = sadd.s32 1, %s1330_s17  ;;  %s27_s23 = ssub.s32 %s1334_s18, %s1393_s21 }
   0xc   : > { %p37_p0 = scmp.ne.s32.totalorder %s1330_s17, %s1326_s16  ;;  %p28_p1 = scmp.eq.s32.totalorder %s27_s23, 0 }
   0xd   : > { %p38_p2 = scmp.eq.s32.totalorder %s1334_s18, 0  ;;  %p43_p3 = scmp.ne.s32.totalorder %s1326_s16, %s1322_s15 }
   0xe   : > { %p44_p4 = scmp.eq.s32.totalorder %s1389_s19, 0  ;;  %p135_p7 = scmp.eq.s32.totalorder %s1389_s19, 1 }
   0xf   : > { %s1405_s24 = scalar_select %p28_p1, %s1330_s17, %s30_s22  }
  0x10   : > { %p1407_p5 = por %p38_p2, %p37_p0  ;;  %p1411_p6 = por %p44_p4, %p43_p3 }
  0x11   : > { %2254 = sst [smem:[#allocation12_spill]] %s1405_s24  ;;  %p141_p8 = scmp.eq.s32.totalorder %s1104_s20, 1 }
  0x12   : > { %p1106_p9 = scmp.ge.s32.totalorder %s1334_s18, 2  ;;  %p1144_p10 = scmp.lt.s32.totalorder %s1334_s18, 2 }
  0x13   : > { %p1418_p11 = por %p135_p7, %p37_p0  ;;  %p1422_p12 = por %p141_p8, %p43_p3 }
  0x14   : > { %s1427_s29 = sand.u32 1, %s1330_s17   ;;  %s1124_s30 = sshll.u32 %s1334_s18, 7 }
  0x15   : > { %s2250_s5 = sshll.u32 %s1427_s29, 6  ;;  %s2259_s0 = sld [smem:[#allocation13_spill]] }
  0x16   : > { %s171_s10 = scalar_lea.vmem [#allocation2], %s2250_s5  ;;  %p1440_p13 = pnand %p1144_p10, %p1407_p5 }
  0x17   : > { %s180_s11 = sshll.u32 %s171_s10, 4  ;;  %p1114_p0 = scmp.ge.s32.totalorder %s1334_s18, 1  ;;  %s181_s11 = int_to_ptr.vmem [resolvable:$true] %s180_s11 }
  0x18   : > { %s168_s13 = scalar_lea.sflag [#allocation3], %s1427_s29  ;;  %p1208_p2 = pneg %p1440_p13 }
  0x1b   : > { %s177_s8 = scalar_lea.hbm %s2259_s0, %s1124_s30  ;;  %s1211_s25 = scalar_lea.hbm %s2259_s0, 256 }
  0x1c   : > { %s178_s9 = sshll.u32 %s177_s8, 4  ;;  %s179_s9 = int_to_ptr.hbm [resolvable:$true] %s178_s9 }
  0x1d   : > { %s1204_s14 = sshra.s32 %s179_s9, 4  ;;  %s1205_s14 = int_to_ptr.hbm [resolvable:$true] %s1204_s14 }
  0x1e   : > { %s1206_s20 = scalar_lea.hbm %s1205_s14, 64  ;;  %p1212_p5 = scmp.lt.s32.totalorder %s1205_s14, %s2259_s0 }
  0x1f   : > { %p1207_p1 = scmp.ne.s32.totalorder %s1205_s14, %s1206_s20  ;;  %p1213_p7 = scmp.lt.s32.totalorder %s1211_s25, %s1206_s20 }
  0x21   : > { %p1209_p3 = pnand %p1208_p2, %p1207_p1  ;;  %p1214_p8 = por %p1213_p7, %p1212_p5 }
  0x23   : > { %p1210_p4 = pneg %p1209_p3 }
  0x25   : > { %p1215_p10 = pnand %p1214_p8, %p1210_p4 }
  0x27   : > { %1218 = shalt.err (!%p1215_p10)
}
  0x28   : > { %s1336_s8 = smov 256   ;;  %s1337_s10 = smov 128  }
  0x29   : > { %s1338_s5 = smov 8   ;;  %p212_p1 = scmp.lt.s32.totalorder %s1334_s18, 3 }
  0x2a   : > { %1136 = dma.hbm_to_vmem [thread:$0]  (!%p1440_p13), %s179_s9, 1024, %s181_s11, %s168_s13, %s1336_s8, %s1337_s10, %s1338_s5  }
  0x2b   : > { %s1046_s22 = scalar_lea.hbm %s2246_s1, %s1124_s30  ;;  %p1469_p3 = pnand %p1114_p0, %p212_p1 }
  0x2c   : > { %s1047_s25 = scalar_lea.hbm %s1046_s22, 8  ;;  %s2262_s7 = sshll.u32 %s1427_s29, 6 }
  0x2d   : > { %s202_s6 = sshll.u32 %s1047_s25, 4  ;;  %s194_s0 = scalar_lea.vmem [#allocation5], %s2262_s7  ;;  %s203_s6 = int_to_ptr.hbm [resolvable:$true] %s202_s6 }
  0x2e   : > { %s204_s24 = sshll.u32 %s194_s0, 4  ;;  %s191_s17 = scalar_lea.sflag [#allocation6], %s1427_s29  ;;  %s205_s24 = int_to_ptr.vmem [resolvable:$true] %s204_s24 }
  0x2f   : > { %s1234_s9 = sshra.s32 %s203_s6, 4  ;;  %s1241_s14 = scalar_lea.hbm %s2246_s1, 256  ;;  %s1235_s9 = int_to_ptr.hbm [resolvable:$true] %s1234_s9 }
  0x30   : > { %s1236_s11 = scalar_lea.hbm %s1235_s9, 64  ;;  %p1242_p0 = scmp.lt.s32.totalorder %s1235_s9, %s2246_s1 }
  0x31   : > { %p1237_p4 = scmp.ne.s32.totalorder %s1235_s9, %s1236_s11  ;;  %p1243_p8 = scmp.lt.s32.totalorder %s1241_s14, %s1236_s11 }
  0x33   : > { %p1239_p5 = pnand %p1237_p4, %p1208_p2  ;;  %p1244_p10 = por %p1243_p8, %p1242_p0 }
  0x35   : > { %p1240_p7 = pneg %p1239_p5 }
  0x37   : > { %p1245_p1 = pnand %p1244_p10, %p1240_p7 }
  0x39   : > { %1248 = shalt.err (!%p1245_p1)
}
  0x3a   : > { %1139 = dma.hbm_to_vmem [thread:$0]  (!%p1440_p13), %s203_s6, 1024, %s205_s24, %s191_s17, %s1336_s8, %s1337_s10, %s1338_s5  }
  0x3b   : > { %216 = sbr.rel (%p1469_p3) target bundleno = 670 (0x29e), region = 36  ;;  %s1492_s0 = sand.u32 (!%p1469_p3), 1, %s1326_s16  }
  0x3c   : > { %s1495_s29 = sshll.u32 (!%p1469_p3), %s1492_s0, 6  ;;  %s219_s25 = scalar_lea.sflag (!%p1469_p3), [#allocation3], %s1492_s0 }
  0x3d   : > { %s1499_s7 = scalar_lea.vmem (!%p1469_p3), [#allocation2], %s1495_s29 }
  0x40   : > { %1309 = dma.done.wait (%p1411_p6), %s219_s25, 1024  }
  0x41   : > { %1311 = vsyncadd (%p1411_p6), %s219_s25, 4294966272  ;;  %s229_s17 = scalar_lea.sflag [#allocation6], %s1492_s0  ;;  %s232_s24 = scalar_lea.vmem [#allocation5], %s1495_s29 }
  0x42   : > { %1313 = dma.done.wait (%p1411_p6), %s229_s17, 1024  }
  0x43   : > { %1315 = vsyncadd (%p1411_p6), %s229_s17, 4294966272  ;;  %v276_v0 = vld [vmem:[%s232_s24 + $0x10] sm:$0xff]  ;;  %v274_v1 = vld [vmem:[%s232_s24] sm:$0xff]  ;;  %s1339_s5 = smov 64   ;;  %vm314_vm0 = vcmask 523264   ;;  %v1340_v32 = vmov 128.0  }
  0x44   : > { %294 = vrot.lane.b32.xlu1 %v276_v0, %s1339_s5  ;;  %290 = vrot.lane.b32.xlu0 %v274_v1, %s1339_s5  ;;  %v278_v2 = vld [vmem:[%s232_s24 + $0x20] sm:$0xff]  ;;  %v277_v3 = vld [vmem:[%s232_s24 + $0x18] sm:$0xff]  ;;  %1186 = vrcp.f32 %v1340_v32  ;;  %vm519_vm9 = vcmask 1041409   ;;  %vm522_vm11 = vcmask 1042434   ;;  %vm525_vm14 = vcmask 1043459   ;;  %s991_s10 = scalar_lea.sflag [#allocation4], %s1492_s0 }
  0x45   : > { %298 = vrot.lane.b32.xlu2 %v278_v2, %s1339_s5  ;;  %v275_v4 = vld [vmem:[%s232_s24 + $0x8] sm:$0xff]  ;;  %v280_v6 = vld [vmem:[%s232_s24 + $0x30] sm:$0xff]  ;;  %v281_v7 = vld [vmem:[%s232_s24 + $0x38] sm:$0xff]  ;;  %s1284_s30 = scalar_lea.hbm %s2249_s4, 128 }
  0x46   : > { %v279_v5 = vld [vmem:[%s232_s24 + $0x28] sm:$0xff]  ;;  %v268_v8 = vld [vmem:[%s1499_s7 + $0x10] sm:$0xff]  ;;  %v266_v9 = vld [vmem:[%s1499_s7] sm:$0xff]  ;;  %s2075_s24 = scalar_lea.vmem [#allocation7], %s1495_s29  ;;  %s1126_s29 = sshll.u32 %s1389_s19, 6 }
  0x47   : > { %v267_v15 = vld [vmem:[%s1499_s7 + $0x8] sm:$0xff]  ;;  %v269_v16 = vld [vmem:[%s1499_s7 + $0x18] sm:$0xff]  ;;  %v272_v23 = vld [vmem:[%s1499_s7 + $0x30] sm:$0xff]  ;;  %s1002_s12 = scalar_lea.hbm %s2249_s4, %s1126_s29  ;;  %s1003_s19 = sshll.u32 %s2075_s24, 4  ;;  %s1004_s19 = int_to_ptr.vmem [resolvable:$true] %s1003_s19 }
  0x48   : > { %v271_v22 = vld [vmem:[%s1499_s7 + $0x28] sm:$0xff]  ;;  %v270_v25 = vld [vmem:[%s1499_s7 + $0x20] sm:$0xff]  ;;  %v273_v30 = vld [vmem:[%s1499_s7 + $0x38] sm:$0xff]  ;;  %s1005_s8 = sshll.u32 %s1002_s12, 4  ;;  %s1006_s8 = int_to_ptr.hbm [resolvable:$true] %s1005_s8 }
  0x49   : > { %v1532_v41 = vld [vmem:[%s2247_s2 + $0x78] sm:$0xff]  ;;  %v1537_v42 = vld [vmem:[%s2247_s2 + $0x70] sm:$0xff]  ;;  %s1278_s23 = sshra.s32 %s1006_s8, 4  ;;  %s1279_s23 = int_to_ptr.hbm [resolvable:$true] %s1278_s23 }
  0x4a   : > { %v1187_v33 = vpop.eup %1186  ;;  %540 = vmatpush.msra.mxu0 %v1532_v41  ;;  %599 = vmatpush.msra.mxu1 %v1532_v41  ;;  %s1280_s6 = scalar_lea.hbm %s1279_s23, 64  ;;  %p1285_p3 = scmp.lt.s32.totalorder %s1279_s23, %s2249_s4 }
  0x4b   : > { %v340_v34 = vmul.f32 128.0, %v1187_v33  ;;  %vm344_vm1 = vweird.f32 %v1187_v33  ;;  %657 = vmatpush.msra.mxu2 %v1532_v41  ;;  %715 = vmatpush.msra.mxu3 %v1532_v41  ;;  %p1281_p6 = scmp.ne.s32.totalorder %s1279_s23, %s1280_s6  ;;  %p1286_p4 = scmp.lt.s32.totalorder %s1284_s30, %s1280_s6 }
  0x4c   : > { %296 = vrot.lane.b32.xlu1 %v277_v3, %s1339_s5  ;;  %292 = vrot.lane.b32.xlu0 %v275_v4, %s1339_s5 }
  0x4d   : > { %300 = vrot.lane.b32.xlu2 %v279_v5, %s1339_s5  ;;  %v341_v35 = vsub.f32 1.0, %v340_v34  ;;  %541 = vmatpush.msra.mxu0 %v1537_v42  ;;  %p1282_p13 = pnand %p1281_p6, %p1418_p11  ;;  %p1287_p5 = por %p1286_p4, %p1285_p3 }
  0x4e   : > { %600 = vmatpush.msra.mxu1 %v1537_v42  ;;  %658 = vmatpush.msra.mxu2 %v1537_v42 }
  0x4f   : > { %v342_v36 = vmul.f32 %v1187_v33, %v341_v35  ;;  %716 = vmatpush.msra.mxu3 %v1537_v42  ;;  %p1283_p2 = pneg %p1282_p13 }
  0x51   : > { %v343_v37 = vadd.f32 %v1187_v33, %v342_v36  ;;  %p1288_p7 = pnand %p1287_p5, %p1283_p2 }
  0x53   : > { %v1527_v38 = vsel %vm344_vm1, %v1187_v33, %v343_v37 }
  0x54   : > { %302 = vrot.lane.b32.xlu0 %v280_v6, %s1339_s5  ;;  %304 = vrot.lane.b32.xlu1 %v281_v7, %s1339_s5 }
  0x9f   : > { %v299_v14 = vpop.permute.xlu2 %298 }
  0xa0   : > { %v319_v28 = vsel %vm314_vm0, %v270_v25, %v299_v14  ;;  %v1635_v14 = vld [vmem:[%s2247_s2 + $0x40] sm:$0xff] }
  0xa7   : > { %v301_v21 = vpop.permute.xlu2 %300 }
  0xa8   : > { %v320_v24 = vsel %vm314_vm0, %v271_v22, %v301_v21  ;;  %v1698_v21 = vld [vmem:[%s2247_s2 + $0x8] sm:$0xff]  ;;  %v1707_v22 = vld [vmem:[%s2247_s2] sm:$0xff] }
  0xb6   : > { %v295_v10 = vpop.permute.xlu1 %294  ;;  %v291_v11 = vpop.permute.xlu0 %290 }
  0xb7   : > { %v317_v12 = vsel %vm314_vm0, %v268_v8, %v295_v10  ;;  %v315_v13 = vsel %vm314_vm0, %v266_v9, %v291_v11  ;;  %v1590_v9 = vld [vmem:[%s2247_s2 + $0x68] sm:$0xff]  ;;  %v1599_v10 = vld [vmem:[%s2247_s2 + $0x60] sm:$0xff]  ;;  %v1608_v11 = vld [vmem:[%s2247_s2 + $0x58] sm:$0xff] }
  0xb8   : > { %327 = vadd.xlane.f32.xlu1 %v317_v12  ;;  %323 = vadd.xlane.f32.xlu2 %v315_v13 }
  0xb9   : > { %542 = vmatpush.msra.mxu0 %v1590_v9  ;;  %601 = vmatpush.msra.mxu1 %v1590_v9 }
  0xba   : > { %659 = vmatpush.msra.mxu2 %v1590_v9  ;;  %717 = vmatpush.msra.mxu3 %v1590_v9 }
  0xbb   : > { %543 = vmatpush.msra.mxu0 %v1599_v10  ;;  %602 = vmatpush.msra.mxu1 %v1599_v10 }
  0xbc   : > { %660 = vmatpush.msra.mxu2 %v1599_v10  ;;  %718 = vmatpush.msra.mxu3 %v1599_v10 }
  0xbd   : > { %544 = vmatpush.msra.mxu0 %v1608_v11  ;;  %603 = vmatpush.msra.mxu1 %v1608_v11 }
  0xbe   : > { %v297_v17 = vpop.permute.xlu1 %296  ;;  %v293_v18 = vpop.permute.xlu0 %292  ;;  %661 = vmatpush.msra.mxu2 %v1608_v11  ;;  %719 = vmatpush.msra.mxu3 %v1608_v11 }
  0xbf   : > { %v316_v19 = vsel %vm314_vm0, %v267_v15, %v293_v18  ;;  %v318_v20 = vsel %vm314_vm0, %v269_v16, %v297_v17  ;;  %v1644_v15 = vld [vmem:[%s2247_s2 + $0x38] sm:$0xff]  ;;  %v1653_v16 = vld [vmem:[%s2247_s2 + $0x30] sm:$0xff]  ;;  %v1662_v17 = vld [vmem:[%s2247_s2 + $0x28] sm:$0xff] }
  0xc0   : > { %325 = vadd.xlane.f32.xlu0 %v316_v19  ;;  %329 = vadd.xlane.f32.xlu2 %v318_v20  ;;  %v1671_v18 = vld [vmem:[%s2247_s2 + $0x20] sm:$0xff] }
  0xc6   : > { %v303_v26 = vpop.permute.xlu0 %302  ;;  %v305_v29 = vpop.permute.xlu1 %304 }
  0xc7   : > { %v321_v27 = vsel %vm314_vm0, %v272_v23, %v303_v26  ;;  %v322_v31 = vsel %vm314_vm0, %v273_v30, %v305_v29 }
  0xc8   : > { %335 = vadd.xlane.f32.xlu1 %v321_v27  ;;  %333 = vadd.xlane.f32.xlu0 %v320_v24 }
  0xc9   : > { %331 = vadd.xlane.f32.xlu2 %v319_v28 }
  0xd1   : > { %337 = vadd.xlane.f32.xlu2 %v322_v31 }
 0x12b   : > { %v328_v39 = vpop.xlane.xlu1 %327  ;;  %v324_v40 = vpop.xlane.xlu2 %323 }
 0x12c   : > { %v348_v43 = vmul.f32 %v1527_v38, %v328_v39  ;;  %v346_v44 = vmul.f32 %v1527_v38, %v324_v40 }
 0x12e   : > { %v1545_v45 = vsub.f32 %v317_v12, %v348_v43  ;;  %v1547_v46 = vsub.f32 %v315_v13, %v346_v44  ;;  %v1617_v12 = vld [vmem:[%s2247_s2 + $0x50] sm:$0xff]  ;;  %v1626_v13 = vld [vmem:[%s2247_s2 + $0x48] sm:$0xff] }
 0x12f   : > { %545 = vmatpush.msra.mxu0 %v1617_v12  ;;  %604 = vmatpush.msra.mxu1 %v1617_v12 }
 0x130   : > { %v364_v47 = vmul.f32 %v1545_v45, %v1545_v45  ;;  %v362_v48 = vmul.f32 %v1547_v46, %v1547_v46  ;;  %662 = vmatpush.msra.mxu2 %v1617_v12  ;;  %720 = vmatpush.msra.mxu3 %v1617_v12 }
 0x131   : > { %546 = vmatpush.msra.mxu0 %v1626_v13  ;;  %605 = vmatpush.msra.mxu1 %v1626_v13 }
 0x132   : > { %374 = vadd.xlane.f32.xlu2 %v364_v47  ;;  %370 = vadd.xlane.f32.xlu0 %v362_v48 }
 0x133   : > { %v326_v49 = vpop.xlane.xlu0 %325  ;;  %v330_v50 = vpop.xlane.xlu2 %329  ;;  %663 = vmatpush.msra.mxu2 %v1626_v13  ;;  %721 = vmatpush.msra.mxu3 %v1626_v13 }
 0x134   : > { %v347_v51 = vmul.f32 %v1527_v38, %v326_v49  ;;  %v349_v52 = vmul.f32 %v1527_v38, %v330_v50  ;;  %547 = vmatpush.msra.mxu0 %v1635_v14  ;;  %606 = vmatpush.msra.mxu1 %v1635_v14 }
 0x135   : > { %664 = vmatpush.msra.mxu2 %v1635_v14  ;;  %722 = vmatpush.msra.mxu3 %v1635_v14 }
 0x136   : > { %v1559_v53 = vsub.f32 %v316_v19, %v347_v51  ;;  %v1561_v54 = vsub.f32 %v318_v20, %v349_v52  ;;  %548 = vmatpush.msra.mxu0 %v1644_v15  ;;  %607 = vmatpush.msra.mxu1 %v1644_v15  ;;  %v1680_v19 = vld [vmem:[%s2247_s2 + $0x18] sm:$0xff]  ;;  %v1689_v20 = vld [vmem:[%s2247_s2 + $0x10] sm:$0xff] }
 0x137   : > { %665 = vmatpush.msra.mxu2 %v1644_v15  ;;  %723 = vmatpush.msra.mxu3 %v1644_v15 }
 0x138   : > { %v363_v55 = vmul.f32 %v1559_v53, %v1559_v53  ;;  %v365_v56 = vmul.f32 %v1561_v54, %v1561_v54  ;;  %549 = vmatpush.msra.mxu0 %v1653_v16  ;;  %608 = vmatpush.msra.mxu1 %v1653_v16 }
 0x139   : > { %666 = vmatpush.msra.mxu2 %v1653_v16  ;;  %724 = vmatpush.msra.mxu3 %v1653_v16 }
 0x13a   : > { %372 = vadd.xlane.f32.xlu1 %v363_v55  ;;  %376 = vadd.xlane.f32.xlu0 %v365_v56 }
 0x13b   : > { %v336_v57 = vpop.xlane.xlu1 %335  ;;  %v334_v58 = vpop.xlane.xlu0 %333  ;;  %550 = vmatpush.msra.mxu0 %v1662_v17  ;;  %609 = vmatpush.msra.mxu1 %v1662_v17 }
 0x13c   : > { %v352_v59 = vmul.f32 %v1527_v38, %v336_v57  ;;  %v351_v60 = vmul.f32 %v1527_v38, %v334_v58  ;;  %v332_v61 = vpop.xlane.xlu2 %331  ;;  %667 = vmatpush.msra.mxu2 %v1662_v17  ;;  %725 = vmatpush.msra.mxu3 %v1662_v17 }
 0x13d   : > { %v350_v62 = vmul.f32 %v1527_v38, %v332_v61  ;;  %551 = vmatpush.msra.mxu0 %v1671_v18  ;;  %610 = vmatpush.msra.mxu1 %v1671_v18 }
 0x13e   : > { %v1570_v63 = vsub.f32 %v321_v27, %v352_v59  ;;  %v1572_v0 = vsub.f32 %v320_v24, %v351_v60  ;;  %668 = vmatpush.msra.mxu2 %v1671_v18  ;;  %726 = vmatpush.msra.mxu3 %v1671_v18 }
 0x13f   : > { %v1574_v1 = vsub.f32 %v319_v28, %v350_v62  ;;  %552 = vmatpush.msra.mxu0 %v1680_v19  ;;  %611 = vmatpush.msra.mxu1 %v1680_v19 }
 0x140   : > { %v367_v2 = vmul.f32 %v1572_v0, %v1572_v0  ;;  %v368_v3 = vmul.f32 %v1570_v63, %v1570_v63  ;;  %669 = vmatpush.msra.mxu2 %v1680_v19  ;;  %727 = vmatpush.msra.mxu3 %v1680_v19 }
 0x141   : > { %v366_v4 = vmul.f32 %v1574_v1, %v1574_v1  ;;  %553 = vmatpush.msra.mxu0 %v1689_v20  ;;  %612 = vmatpush.msra.mxu1 %v1689_v20 }
 0x142   : > { %380 = vadd.xlane.f32.xlu2 %v367_v2  ;;  %382 = vadd.xlane.f32.xlu0 %v368_v3 }
 0x143   : > { %378 = vadd.xlane.f32.xlu1 %v366_v4  ;;  %670 = vmatpush.msra.mxu2 %v1689_v20 }
 0x144   : > { %v338_v5 = vpop.xlane.xlu2 %337  ;;  %728 = vmatpush.msra.mxu3 %v1689_v20  ;;  %554 = vmatpush.msra.mxu0 %v1698_v21 }
 0x145   : > { %v353_v6 = vmul.f32 %v1527_v38, %v338_v5  ;;  %613 = vmatpush.msra.mxu1 %v1698_v21  ;;  %671 = vmatpush.msra.mxu2 %v1698_v21 }
 0x146   : > { %729 = vmatpush.msra.mxu3 %v1698_v21  ;;  %555 = vmatpush.msra.mxu0 %v1707_v22 }
 0x147   : > { %v1583_v7 = vsub.f32 %v322_v31, %v353_v6  ;;  %614 = vmatpush.msra.mxu1 %v1707_v22  ;;  %672 = vmatpush.msra.mxu2 %v1707_v22 }
 0x148   : > { %730 = vmatpush.msra.mxu3 %v1707_v22  ;;  %773 = vmatpush.msrb.mxu0 %v1532_v41 }
 0x149   : > { %v369_v8 = vmul.f32 %v1583_v7, %v1583_v7  ;;  %831 = vmatpush.msrb.mxu1 %v1532_v41  ;;  %889 = vmatpush.msrb.mxu2 %v1532_v41 }
 0x14a   : > { %947 = vmatpush.msrb.mxu3 %v1532_v41  ;;  %774 = vmatpush.msrb.mxu0 %v1537_v42 }
 0x14b   : > { %384 = vadd.xlane.f32.xlu1 %v369_v8  ;;  %832 = vmatpush.msrb.mxu1 %v1537_v42 }
 0x14c   : > { %890 = vmatpush.msrb.mxu2 %v1537_v42  ;;  %948 = vmatpush.msrb.mxu3 %v1537_v42 }
 0x14d   : > { %775 = vmatpush.msrb.mxu0 %v1590_v9  ;;  %833 = vmatpush.msrb.mxu1 %v1590_v9 }
 0x14e   : > { %891 = vmatpush.msrb.mxu2 %v1590_v9  ;;  %949 = vmatpush.msrb.mxu3 %v1590_v9 }
 0x14f   : > { %776 = vmatpush.msrb.mxu0 %v1599_v10  ;;  %834 = vmatpush.msrb.mxu1 %v1599_v10 }
 0x150   : > { %892 = vmatpush.msrb.mxu2 %v1599_v10  ;;  %950 = vmatpush.msrb.mxu3 %v1599_v10 }
 0x151   : > { %777 = vmatpush.msrb.mxu0 %v1608_v11  ;;  %835 = vmatpush.msrb.mxu1 %v1608_v11 }
 0x152   : > { %893 = vmatpush.msrb.mxu2 %v1608_v11  ;;  %951 = vmatpush.msrb.mxu3 %v1608_v11 }
 0x153   : > { %778 = vmatpush.msrb.mxu0 %v1617_v12  ;;  %836 = vmatpush.msrb.mxu1 %v1617_v12 }
 0x154   : > { %894 = vmatpush.msrb.mxu2 %v1617_v12  ;;  %952 = vmatpush.msrb.mxu3 %v1617_v12 }
 0x155   : > { %779 = vmatpush.msrb.mxu0 %v1626_v13  ;;  %837 = vmatpush.msrb.mxu1 %v1626_v13 }
 0x156   : > { %895 = vmatpush.msrb.mxu2 %v1626_v13  ;;  %953 = vmatpush.msrb.mxu3 %v1626_v13 }
 0x157   : > { %780 = vmatpush.msrb.mxu0 %v1635_v14  ;;  %838 = vmatpush.msrb.mxu1 %v1635_v14 }
 0x158   : > { %896 = vmatpush.msrb.mxu2 %v1635_v14  ;;  %954 = vmatpush.msrb.mxu3 %v1635_v14 }
 0x159   : > { %781 = vmatpush.msrb.mxu0 %v1644_v15  ;;  %839 = vmatpush.msrb.mxu1 %v1644_v15 }
 0x15a   : > { %897 = vmatpush.msrb.mxu2 %v1644_v15  ;;  %955 = vmatpush.msrb.mxu3 %v1644_v15 }
 0x15b   : > { %782 = vmatpush.msrb.mxu0 %v1653_v16  ;;  %840 = vmatpush.msrb.mxu1 %v1653_v16 }
 0x15c   : > { %898 = vmatpush.msrb.mxu2 %v1653_v16  ;;  %956 = vmatpush.msrb.mxu3 %v1653_v16 }
 0x15d   : > { %783 = vmatpush.msrb.mxu0 %v1662_v17  ;;  %841 = vmatpush.msrb.mxu1 %v1662_v17 }
 0x15e   : > { %899 = vmatpush.msrb.mxu2 %v1662_v17  ;;  %957 = vmatpush.msrb.mxu3 %v1662_v17 }
 0x15f   : > { %784 = vmatpush.msrb.mxu0 %v1671_v18  ;;  %842 = vmatpush.msrb.mxu1 %v1671_v18 }
 0x160   : > { %900 = vmatpush.msrb.mxu2 %v1671_v18  ;;  %958 = vmatpush.msrb.mxu3 %v1671_v18 }
 0x161   : > { %785 = vmatpush.msrb.mxu0 %v1680_v19  ;;  %843 = vmatpush.msrb.mxu1 %v1680_v19 }
 0x162   : > { %901 = vmatpush.msrb.mxu2 %v1680_v19  ;;  %959 = vmatpush.msrb.mxu3 %v1680_v19 }
 0x163   : > { %786 = vmatpush.msrb.mxu0 %v1689_v20  ;;  %844 = vmatpush.msrb.mxu1 %v1689_v20 }
 0x164   : > { %902 = vmatpush.msrb.mxu2 %v1689_v20  ;;  %960 = vmatpush.msrb.mxu3 %v1689_v20 }
 0x165   : > { %787 = vmatpush.msrb.mxu0 %v1698_v21  ;;  %845 = vmatpush.msrb.mxu1 %v1698_v21 }
 0x166   : > { %903 = vmatpush.msrb.mxu2 %v1698_v21  ;;  %961 = vmatpush.msrb.mxu3 %v1698_v21 }
 0x167   : > { %788 = vmatpush.msrb.mxu0 %v1707_v22  ;;  %846 = vmatpush.msrb.mxu1 %v1707_v22 }
 0x168   : > { %904 = vmatpush.msrb.mxu2 %v1707_v22  ;;  %962 = vmatpush.msrb.mxu3 %v1707_v22 }
 0x1a5   : > { %v371_v23 = vpop.xlane.xlu0 %370  ;;  %v375_v24 = vpop.xlane.xlu2 %374 }
 0x1a6   : > { %v386_v25 = vmul.f32 %v371_v23, %v1527_v38  ;;  %v388_v26 = vmul.f32 %v375_v24, %v1527_v38 }
 0x1a8   : > { %v1717_v27 = vadd.f32 1e-05, %v386_v25  ;;  %v1719_v28 = vadd.f32 1e-05, %v388_v26 }
 0x1aa   : > { %1188 = vrsqrt.f32 %v1717_v27  ;;  %vm408_vm3 = vweird.f32 %v1717_v27  ;;  %vm428_vm6 = vweird.f32 %v1719_v28 }
 0x1ab   : > { %1190 = vrsqrt.f32 %v1719_v28 }
 0x1ad   : > { %v373_v29 = vpop.xlane.xlu1 %372  ;;  %v377_v30 = vpop.xlane.xlu0 %376 }
 0x1ae   : > { %v387_v31 = vmul.f32 %v373_v29, %v1527_v38  ;;  %v389_v32 = vmul.f32 %v377_v30, %v1527_v38 }
 0x1b0   : > { %v1741_v33 = vpop.eup %1188  ;;  %v1743_v34 = vadd.f32 1e-05, %v387_v31  ;;  %v1745_v35 = vadd.f32 1e-05, %v389_v32 }
 0x1b1   : > { %v1749_v36 = vpop.eup %1190  ;;  %v403_v37 = vmul.f32 %v1741_v33, %v1717_v27  ;;  %vm409_vm2 = vweird.f32 %v1741_v33 }
 0x1b2   : > { %v423_v39 = vmul.f32 %v1749_v36, %v1719_v28  ;;  %1192 = vrsqrt.f32 %v1743_v34  ;;  %vm429_vm4 = vweird.f32 %v1749_v36  ;;  %vm410_vm5 = vmor %vm408_vm3, %vm409_vm2  ;;  %vm418_vm8 = vweird.f32 %v1743_v34 }
 0x1b3   : > { %v404_v40 = vmul.f32 %v1741_v33, %v403_v37  ;;  %1194 = vrsqrt.f32 %v1745_v35  ;;  %vm430_vm7 = vmor %vm428_vm6, %vm429_vm4  ;;  %vm438_vm10 = vweird.f32 %v1745_v35 }
 0x1b4   : > { %v424_v41 = vmul.f32 %v1749_v36, %v423_v39 }
 0x1b5   : > { %v405_v42 = vmul.f32 0.5, %v404_v40  ;;  %v383_v43 = vpop.xlane.xlu0 %382  ;;  %v381_v44 = vpop.xlane.xlu2 %380 }
 0x1b6   : > { %v425_v47 = vmul.f32 0.5, %v424_v41  ;;  %v392_v48 = vmul.f32 %v383_v43, %v1527_v38  ;;  %v379_v49 = vpop.xlane.xlu1 %378  ;;  %v391_v50 = vmul.f32 %v381_v44, %v1527_v38 }
 0x1b7   : > { %v406_v51 = vsub.f32 1.5, %v405_v42  ;;  %v390_v52 = vmul.f32 %v379_v49, %v1527_v38 }
 0x1b8   : > { %v1777_v55 = vpop.eup %1192  ;;  %v426_v56 = vsub.f32 1.5, %v425_v47  ;;  %v1781_v57 = vadd.f32 1e-05, %v392_v48  ;;  %v1792_v62 = vadd.f32 1e-05, %v391_v50 }
 0x1b9   : > { %v1785_v58 = vpop.eup %1194  ;;  %v407_v59 = vmul.f32 %v1741_v33, %v406_v51  ;;  %v413_v60 = vmul.f32 %v1777_v55, %v1743_v34  ;;  %v1790_v61 = vadd.f32 1e-05, %v390_v52  ;;  %vm419_vm12 = vweird.f32 %v1777_v55 }
 0x1ba   : > { %v427_v2 = vmul.f32 %v1749_v36, %v426_v56  ;;  %v433_v3 = vmul.f32 %v1785_v58, %v1745_v35  ;;  %1196 = vrsqrt.f32 %v1781_v57  ;;  %vm439_vm13 = vweird.f32 %v1785_v58  ;;  %vm1860_vm0 = vmor %vm418_vm8, %vm419_vm12 }
 0x1bb   : > { %v411_v4 = vsel %vm410_vm5, %v1741_v33, %v407_v59  ;;  %v414_v5 = vmul.f32 %v1777_v55, %v413_v60  ;;  %1198 = vrsqrt.f32 %v1790_v61  ;;  %vm468_vm15 = vweird.f32 %v1781_v57  ;;  %vm440_vm4 = vmor %vm438_vm10, %vm439_vm13 }
 0x1bc   : > { %v1814_v6 = vmul.f32 %v411_v4, %v1547_v46  ;;  %v431_v8 = vsel %vm430_vm7, %v1749_v36, %v427_v2  ;;  %v434_v9 = vmul.f32 %v1785_v58, %v433_v3  ;;  %1200 = vrsqrt.f32 %v1792_v62 }
 0x1bd   : > { %v1822_v10 = vmul.f32 %v431_v8, %v1545_v45  ;;  %v415_v11 = vmul.f32 0.5, %v414_v5  ;;  %vm448_vm2 = vweird.f32 %v1790_v61  ;;  %vm458_vm5 = vweird.f32 %v1792_v62 }
 0x1be   : > { %v435_v46 = vmul.f32 0.5, %v434_v9  ;;  %v385_v12 = vpop.xlane.xlu1 %384  ;;  %v584_v45 = vrot.slane %v1814_v6, 1  ;;  %v642_v13 = vrot.slane %v1814_v6, 2  ;;  %v700_v17 = vrot.slane %v1814_v6, 3 }
 0x1bf   : > { %v416_v14 = vsub.f32 1.5, %v415_v11  ;;  %v393_v15 = vmul.f32 %v385_v12, %v1527_v38  ;;  %v521_v16 = vrot.slane %v1822_v10, 6  ;;  %v586_v18 = vrot.slane %v1822_v10, 7 }
 0x1c0   : > { %v1838_v23 = vpop.eup %1196  ;;  %v436_v24 = vsub.f32 1.5, %v435_v46  ;;  %v703_v25 = vrot.slane %v1822_v10, 1  ;;  %v758_v38 = vrot.slane %v1814_v6, 4  ;;  %v761_v30 = vrot.slane %v1822_v10, 2 }
 0x1c1   : > { %v1845_v26 = vpop.eup %1198  ;;  %v417_v27 = vmul.f32 %v1777_v55, %v416_v14  ;;  %v463_v28 = vmul.f32 %v1838_v23, %v1781_v57  ;;  %v1851_v29 = vadd.f32 1e-05, %v393_v15  ;;  %vm469_vm1 = vweird.f32 %v1838_v23 }
 0x1c2   : > { %v437_v31 = vmul.f32 %v1785_v58, %v436_v24  ;;  %v443_v32 = vmul.f32 %v1845_v26, %v1790_v61  ;;  %vm449_vm3 = vweird.f32 %v1845_v26  ;;  %v1872_v33 = vpop.eup %1200  ;;  %v816_v20 = vrot.slane %v1814_v6, 5  ;;  %vm470_vm12 = vmor %vm468_vm15, %vm469_vm1 }
 0x1c3   : > { %v421_v34 = vsel %vm1860_vm0, %v1777_v55, %v417_v27  ;;  %v464_v36 = vmul.f32 %v1838_v23, %v463_v28  ;;  %1202 = vrsqrt.f32 %v1851_v29  ;;  %v453_v35 = vmul.f32 %v1872_v33, %v1792_v62 }
 0x1c4   : > { %v1887_v37 = vmul.f32 %v421_v34, %v1559_v53  ;;  %v441_v39 = vsel %vm440_vm4, %v1785_v58, %v437_v31  ;;  %v444_v40 = vmul.f32 %v1845_v26, %v443_v32  ;;  %vm459_vm6 = vweird.f32 %v1872_v33  ;;  %vm450_vm4 = vmor %vm448_vm2, %vm449_vm3 }
 0x1c5   : > { %v1896_v41 = vmul.f32 %v441_v39, %v1561_v54  ;;  %v465_v42 = vmul.f32 0.5, %v464_v36  ;;  %v819_v53 = vrot.slane %v1822_v10, 3  ;;  %v454_v44 = vmul.f32 %v1872_v33, %v453_v35  ;;  %vm460_vm15 = vmor %vm458_vm5, %vm459_vm6 }
 0x1c6   : > { %v445_v43 = vmul.f32 0.5, %v444_v40  ;;  %v518_v47 = vrot.slane %v1887_v37, 7  ;;  %v585_v48 = vsel %vm519_vm9, %v1887_v37, %v584_v45  ;;  %vm528_vm7 = vcmask 1044484  }
 0x1c7   : > { %v466_v54 = vsub.f32 1.5, %v465_v42  ;;  %v524_v49 = vrot.slane %v1896_v41, 5  ;;  %v587_v21 = vsel %vm522_vm11, %v586_v18, %v585_v48  ;;  %v588_v50 = vrot.slane %v1896_v41, 6 }
 0x1c8   : > { %v446_v51 = vsub.f32 1.5, %v445_v43  ;;  %v455_v52 = vmul.f32 0.5, %v454_v44  ;;  %v520_v55 = vsel %vm519_vm9, %v518_v47, %v1814_v6  ;;  %vm531_vm8 = vcmask 1045509  }
 0x1c9   : > { %v643_v56 = vrot.slane %v1887_v37, 1  ;;  %v1203_v58 = vpop.eup %1202  ;;  %v467_v59 = vmul.f32 %v1838_v23, %v466_v54  ;;  %v523_v60 = vsel %vm522_vm11, %v521_v16, %v520_v55  ;;  %vm534_vm10 = vcmask 1046534  }
 0x1ca   : > { %v589_v2 = vsel %vm525_vm14, %v588_v50, %v587_v21  ;;  %v646_v22 = vrot.slane %v1896_v41, 7  ;;  %v447_v3 = vmul.f32 %v1845_v26, %v446_v51  ;;  %v456_v4 = vsub.f32 1.5, %v455_v52 }
 0x1cb   : > { %v473_v5 = vmul.f32 %v1203_v58, %v1851_v29  ;;  %vm478_vm13 = vweird.f32 %v1851_v29  ;;  %vm479_vm0 = vweird.f32 %v1203_v58  ;;  %v471_v8 = vsel %vm470_vm12, %v1838_v23, %v467_v59 }
 0x1cc   : > { %v526_v9 = vsel %vm525_vm14, %v524_v49, %v523_v60  ;;  %v644_v57 = vsel %vm519_vm9, %v643_v56, %v642_v13  ;;  %v701_v11 = vrot.slane %v1887_v37, 2  ;;  %v1939_v46 = vmul.f32 %v471_v8, %v1570_v63  ;;  %vm480_vm2 = vmor %vm478_vm13, %vm479_vm0 }
 0x1cd   : > { %v451_v12 = vsel %vm450_vm4, %v1845_v26, %v447_v3  ;;  %v457_v45 = vmul.f32 %v1872_v33, %v456_v4  ;;  %v474_v14 = vmul.f32 %v1203_v58, %v473_v5  ;;  %v645_v61 = vsel %vm522_vm11, %v1822_v10, %v644_v57 }
 0x1ce   : > { %v1944_v15 = vmul.f32 %v451_v12, %v1574_v1  ;;  %v702_v63 = vsel %vm519_vm9, %v701_v11, %v700_v17  ;;  %v759_v13 = vrot.slane %v1887_v37, 3  ;;  %v533_v1 = vrot.slane %v1939_v46, 2 }
 0x1cf   : > { %v461_v16 = vsel %vm460_vm15, %v1872_v33, %v457_v45  ;;  %v475_v23 = vmul.f32 0.5, %v474_v14  ;;  %v594_v24 = vrot.slane %v1939_v46, 3  ;;  %v647_v27 = vsel %vm525_vm14, %v646_v22, %v645_v61 }
 0x1d0   : > { %v1960_v18 = vmul.f32 %v461_v16, %v1572_v0  ;;  %v527_v62 = vrot.slane %v1944_v15, 4  ;;  %v590_v26 = vrot.slane %v1944_v15, 5  ;;  %vm537_vm1 = vcmask 1047559  }
 0x1d1   : > { %v476_v28 = vsub.f32 1.5, %v475_v23  ;;  %v648_v17 = vrot.slane %v1944_v15, 6  ;;  %v652_v19 = vrot.slane %v1939_v46, 4  ;;  %v704_v31 = vsel %vm522_vm11, %v703_v25, %v702_v63 }
 0x1d2   : > { %v529_v32 = vsel %vm528_vm7, %v527_v62, %v526_v9  ;;  %v530_v0 = vrot.slane %v1960_v18, 3  ;;  %v591_v33 = vsel %vm528_vm7, %v590_v26, %v589_v2  ;;  %v592_v34 = vrot.slane %v1960_v18, 4 }
 0x1d3   : > { %v477_v36 = vmul.f32 %v1203_v58, %v476_v28  ;;  %v649_v39 = vsel %vm528_vm7, %v648_v17, %v647_v27  ;;  %v650_v40 = vrot.slane %v1960_v18, 5  ;;  %v705_v35 = vsel %vm525_vm14, %v1896_v41, %v704_v31 }
 0x1d4   : > { %v532_v25 = vsel %vm531_vm8, %v530_v0, %v529_v32  ;;  %v593_v42 = vsel %vm531_vm8, %v592_v34, %v591_v33  ;;  %v706_v43 = vrot.slane %v1944_v15, 7  ;;  %v708_v44 = vrot.slane %v1960_v18, 6 }
 0x1d5   : > { %v481_v47 = vsel %vm480_vm2, %v1203_v58, %v477_v36  ;;  %v535_v48 = vsel %vm534_vm10, %v533_v1, %v532_v25  ;;  %v595_v54 = vsel %vm534_vm10, %v594_v24, %v593_v42  ;;  %v651_v49 = vsel %vm531_vm8, %v650_v40, %v649_v39 }
 0x1d6   : > { %v1989_v21 = vmul.f32 %v481_v47, %v1583_v7  ;;  %v653_v29 = vsel %vm534_vm10, %v652_v19, %v651_v49  ;;  %v707_v50 = vsel %vm528_vm7, %v706_v43, %v705_v35  ;;  %v710_v51 = vrot.slane %v1939_v46, 5 }
 0x1d7   : > { %v709_v52 = vsel %vm531_vm8, %v708_v44, %v707_v50  ;;  %v760_v55 = vsel %vm519_vm9, %v759_v13, %v758_v38  ;;  %v763_v56 = vrot.slane %v1896_v41, 1  ;;  %v766_v58 = vrot.slane %v1960_v18, 7 }
 0x1d8   : > { %v536_v59 = vrot.slane %v1989_v21, 1  ;;  %v596_v7 = vrot.slane %v1989_v21, 2  ;;  %v654_v60 = vrot.slane %v1989_v21, 3  ;;  %v711_v2 = vsel %vm534_vm10, %v710_v51, %v709_v52  ;;  %v2070_v51 = vld [vmem:[%s2248_s3] ss:$0 sm:$0xff] }
 0x1d9   : > { %v712_v22 = vrot.slane %v1989_v21, 4  ;;  %v762_v3 = vsel %vm522_vm11, %v761_v30, %v760_v55  ;;  %v768_v38 = vrot.slane %v1939_v46, 6  ;;  %v770_v4 = vrot.slane %v1989_v21, 5 }
 0x1da   : > { %v538_v5 = vsel %vm537_vm1, %v536_v59, %v535_v48  ;;  %v597_v8 = vsel %vm537_vm1, %v596_v7, %v595_v54  ;;  %v655_v9 = vsel %vm537_vm1, %v654_v60, %v653_v29  ;;  %v764_v57 = vsel %vm525_vm14, %v763_v56, %v762_v3 }
 0x1db   : > { %556 = vmatmul.f32.vlgmr.msra.gmra.mxu0 %v538_v5  ;;  %615 = vmatmul.f32.vlgmr.msra.gmra.mxu1 %v597_v8  ;;  %v713_v11 = vsel %vm537_vm1, %v712_v22, %v711_v2  ;;  %v765_v12 = vsel %vm528_vm7, %v1944_v15, %v764_v57  ;;  %v817_v30 = vrot.slane %v1887_v37, 4  ;;  %v821_v45 = vrot.slane %v1896_v41, 2 }
 0x1dc   : > { %673 = vmatmul.f32.vlgmr.msra.gmra.mxu2 %v655_v9  ;;  %731 = vmatmul.f32.vlgmr.msra.gmra.mxu3 %v713_v11  ;;  %v767_v14 = vsel %vm531_vm8, %v766_v58, %v765_v12  ;;  %v823_v61 = vrot.slane %v1944_v15, 1  ;;  %v826_v63 = vrot.slane %v1939_v46, 7  ;;  %v828_v13 = vrot.slane %v1989_v21, 6 }
 0x1dd   : > { %v769_v16 = vsel %vm534_vm10, %v768_v38, %v767_v14  ;;  %v818_v23 = vsel %vm519_vm9, %v817_v30, %v816_v20  ;;  %v874_v1 = vrot.slane %v1814_v6, 6  ;;  %v875_v24 = vrot.slane %v1887_v37, 5 }
 0x1de   : > { %v771_v62 = vsel %vm537_vm1, %v770_v4, %v769_v16  ;;  %v820_v26 = vsel %vm522_vm11, %v819_v53, %v818_v23  ;;  %v877_v27 = vrot.slane %v1822_v10, 4  ;;  %v879_v28 = vrot.slane %v1896_v41, 3 }
 0x1df   : > { %v822_v17 = vsel %vm525_vm14, %v821_v45, %v820_v26  ;;  %v876_v19 = vsel %vm519_vm9, %v875_v24, %v874_v1  ;;  %v881_v20 = vrot.slane %v1944_v15, 2  ;;  %v883_v31 = vrot.slane %v1960_v18, 1 }
 0x1e0   : > { %v824_v32 = vsel %vm528_vm7, %v823_v61, %v822_v17  ;;  %v878_v0 = vsel %vm522_vm11, %v877_v27, %v876_v19  ;;  %v886_v33 = vrot.slane %v1989_v21, 7  ;;  %v932_v53 = vrot.slane %v1814_v6, 7 }
 0x1e1   : > { %v825_v34 = vsel %vm531_vm8, %v1960_v18, %v824_v32  ;;  %v880_v36 = vsel %vm525_vm14, %v879_v28, %v878_v0  ;;  %v933_v39 = vrot.slane %v1887_v37, 6  ;;  %v935_v40 = vrot.slane %v1822_v10, 5 }
 0x1e2   : > { %v827_v35 = vsel %vm534_vm10, %v826_v63, %v825_v34  ;;  %v882_v25 = vsel %vm528_vm7, %v881_v20, %v880_v36  ;;  %v937_v42 = vrot.slane %v1896_v41, 4  ;;  %v939_v43 = vrot.slane %v1944_v15, 3 }
 0x1e3   : > { %789 = vmatmul.f32.vlgmr.msrb.gmra.mxu0 %v771_v62  ;;  %v829_v6 = vsel %vm537_vm1, %v828_v13, %v827_v35  ;;  %v884_v44 = vsel %vm531_vm8, %v883_v31, %v882_v25  ;;  %v934_v47 = vsel %vm519_vm9, %v933_v39, %v932_v53  ;;  %v941_v48 = vrot.slane %v1960_v18, 2 }
 0x1e4   : > { %847 = vmatmul.f32.vlgmr.msrb.gmra.mxu1 %v829_v6  ;;  %v885_v10 = vsel %vm534_vm10, %v1939_v46, %v884_v44  ;;  %v936_v37 = vsel %vm522_vm11, %v935_v40, %v934_v47  ;;  %v943_v49 = vrot.slane %v1939_v46, 1  ;;  %vm575_vm9 = vcmask 516096  }
 0x1e5   : > { %v887_v54 = vsel %vm537_vm1, %v886_v33, %v885_v10  ;;  %v938_v41 = vsel %vm525_vm14, %v937_v42, %v936_v37 }
 0x1e6   : > { %905 = vmatmul.f32.vlgmr.msrb.gmra.mxu2 %v887_v54  ;;  %v940_v15 = vsel %vm528_vm7, %v939_v43, %v938_v41 }
 0x1e7   : > { %v942_v29 = vsel %vm531_vm8, %v941_v48, %v940_v15 }
 0x1e8   : > { %v944_v18 = vsel %vm534_vm10, %v943_v49, %v942_v29 }
 0x1e9   : > { %v945_v50 = vsel %vm537_vm1, %v1989_v21, %v944_v18 }
 0x1ea   : > { %963 = vmatmul.f32.vlgmr.msrb.gmra.mxu3 %v945_v50 }
 0x258   : > { %v557_v52 = vpop.f32.mrf.mxu0  ;;  %v616_v55 = vpop.f32.mrf.mxu1 }
 0x259   : > { %v558_v56 = vadd.f32 %v2070_v51, %v557_v52  ;;  %v617_v46 = vadd.f32 %v2070_v51, %v616_v55 }
 0x25b   : > { %v561_v58 = vrot.slane %v558_v56, 1  ;;  %v562_v59 = vrot.slane %v558_v56, 2  ;;  %v563_v7 = vrot.slane %v558_v56, 3  ;;  %576 = vst.msk [vmem:[%s2075_s24] sm:$0x1] %vm575_vm9, %v558_v56  ;;  %v564_v21 = vrot.slane %v558_v56, 4 }
 0x25c   : > { %634 = vst.msk [vmem:[%s2075_s24 + $0x1] sm:$0x1] %vm575_vm9, %v617_v46  ;;  %v565_v60 = vrot.slane %v558_v56, 5  ;;  %v566_v2 = vrot.slane %v558_v56, 6  ;;  %v567_v22 = vrot.slane %v558_v56, 7  ;;  %v620_v3 = vrot.slane %v617_v46, 1 }
 0x25d   : > { %577 = vst.msk [vmem:[%s2075_s24 + $0x8] sm:$0x1] %vm575_vm9, %v561_v58  ;;  %v621_v38 = vrot.slane %v617_v46, 2  ;;  %v622_v5 = vrot.slane %v617_v46, 3  ;;  %v623_v8 = vrot.slane %v617_v46, 4  ;;  %v624_v9 = vrot.slane %v617_v46, 5 }
 0x25e   : > { %578 = vst.msk [vmem:[%s2075_s24 + $0x10] sm:$0x1] %vm575_vm9, %v562_v59  ;;  %v625_v11 = vrot.slane %v617_v46, 6  ;;  %v626_v12 = vrot.slane %v617_v46, 7 }
 0x25f   : > { %579 = vst.msk [vmem:[%s2075_s24 + $0x18] sm:$0x1] %vm575_vm9, %v563_v7  ;;  %v674_v4 = vpop.f32.mrf.mxu2  ;;  %v732_v14 = vpop.f32.mrf.mxu3 }
 0x260   : > { %580 = vst.msk [vmem:[%s2075_s24 + $0x20] sm:$0x1] %vm575_vm9, %v564_v21  ;;  %v675_v57 = vadd.f32 %v2070_v51, %v674_v4  ;;  %v733_v16 = vadd.f32 %v2070_v51, %v732_v14  ;;  %v790_v26 = vpop.f32.mrf.mxu0 }
 0x261   : > { %581 = vst.msk [vmem:[%s2075_s24 + $0x28] sm:$0x1] %vm575_vm9, %v565_v60  ;;  %v791_v19 = vadd.f32 %v2070_v51, %v790_v26  ;;  %v848_v33 = vpop.f32.mrf.mxu1 }
 0x262   : > { %582 = vst.msk [vmem:[%s2075_s24 + $0x30] sm:$0x1] %vm575_vm9, %v566_v2  ;;  %v678_v30 = vrot.slane %v675_v57, 1  ;;  %v679_v45 = vrot.slane %v675_v57, 2  ;;  %v680_v61 = vrot.slane %v675_v57, 3  ;;  %v681_v63 = vrot.slane %v675_v57, 4 }
 0x263   : > { %583 = vst.msk [vmem:[%s2075_s24 + $0x38] sm:$0x1] %vm575_vm9, %v567_v22  ;;  %v682_v13 = vrot.slane %v675_v57, 5  ;;  %v683_v23 = vrot.slane %v675_v57, 6  ;;  %v684_v1 = vrot.slane %v675_v57, 7  ;;  %v736_v24 = vrot.slane %v733_v16, 1 }
 0x264   : > { %635 = vst.msk [vmem:[%s2075_s24 + $0x9] sm:$0x1] %vm575_vm9, %v620_v3  ;;  %v737_v62 = vrot.slane %v733_v16, 2  ;;  %v738_v27 = vrot.slane %v733_v16, 3  ;;  %v739_v28 = vrot.slane %v733_v16, 4  ;;  %v740_v17 = vrot.slane %v733_v16, 5 }
 0x265   : > { %636 = vst.msk [vmem:[%s2075_s24 + $0x11] sm:$0x1] %vm575_vm9, %v621_v38  ;;  %v741_v20 = vrot.slane %v733_v16, 6  ;;  %v742_v31 = vrot.slane %v733_v16, 7  ;;  %v794_v32 = vrot.slane %v791_v19, 1  ;;  %v795_v0 = vrot.slane %v791_v19, 2 }
 0x266   : > { %637 = vst.msk [vmem:[%s2075_s24 + $0x19] sm:$0x1] %vm575_vm9, %v622_v5  ;;  %v796_v53 = vrot.slane %v791_v19, 3  ;;  %v797_v34 = vrot.slane %v791_v19, 4  ;;  %v798_v36 = vrot.slane %v791_v19, 5  ;;  %v849_v39 = vadd.f32 %v2070_v51, %v848_v33 }
 0x267   : > { %638 = vst.msk [vmem:[%s2075_s24 + $0x21] sm:$0x1] %vm575_vm9, %v623_v8  ;;  %v799_v40 = vrot.slane %v791_v19, 6  ;;  %v800_v35 = vrot.slane %v791_v19, 7 }
 0x268   : > { %639 = vst.msk [vmem:[%s2075_s24 + $0x29] sm:$0x1] %vm575_vm9, %v624_v9  ;;  %v852_v25 = vrot.slane %v849_v39, 1  ;;  %v853_v42 = vrot.slane %v849_v39, 2  ;;  %v854_v6 = vrot.slane %v849_v39, 3  ;;  %v855_v44 = vrot.slane %v849_v39, 4 }
 0x269   : > { %640 = vst.msk [vmem:[%s2075_s24 + $0x31] sm:$0x1] %vm575_vm9, %v625_v11  ;;  %v906_v43 = vpop.f32.mrf.mxu2  ;;  %v856_v47 = vrot.slane %v849_v39, 5  ;;  %v857_v10 = vrot.slane %v849_v39, 6  ;;  %v858_v37 = vrot.slane %v849_v39, 7 }
 0x26a   : > { %641 = vst.msk [vmem:[%s2075_s24 + $0x39] sm:$0x1] %vm575_vm9, %v626_v12  ;;  %v907_v48 = vadd.f32 %v2070_v51, %v906_v43 }
 0x26b   : > { %692 = vst.msk [vmem:[%s2075_s24 + $0x2] sm:$0x1] %vm575_vm9, %v675_v57 }
 0x26c   : > { %693 = vst.msk [vmem:[%s2075_s24 + $0xa] sm:$0x1] %vm575_vm9, %v678_v30  ;;  %v910_v54 = vrot.slane %v907_v48, 1  ;;  %v911_v41 = vrot.slane %v907_v48, 2  ;;  %v912_v49 = vrot.slane %v907_v48, 3  ;;  %v913_v29 = vrot.slane %v907_v48, 4 }
 0x26d   : > { %694 = vst.msk [vmem:[%s2075_s24 + $0x12] sm:$0x1] %vm575_vm9, %v679_v45  ;;  %v964_v15 = vpop.f32.mrf.mxu3  ;;  %v914_v18 = vrot.slane %v907_v48, 5  ;;  %v915_v52 = vrot.slane %v907_v48, 6  ;;  %v916_v55 = vrot.slane %v907_v48, 7 }
 0x26e   : > { %695 = vst.msk [vmem:[%s2075_s24 + $0x1a] sm:$0x1] %vm575_vm9, %v680_v61  ;;  %v965_v50 = vadd.f32 %v2070_v51, %v964_v15 }
 0x26f   : > { %696 = vst.msk [vmem:[%s2075_s24 + $0x22] sm:$0x1] %vm575_vm9, %v681_v63 }
 0x270   : > { %697 = vst.msk [vmem:[%s2075_s24 + $0x2a] sm:$0x1] %vm575_vm9, %v682_v13  ;;  %v968_v56 = vrot.slane %v965_v50, 1  ;;  %v969_v51 = vrot.slane %v965_v50, 2  ;;  %v970_v46 = vrot.slane %v965_v50, 3  ;;  %v971_v58 = vrot.slane %v965_v50, 4 }
 0x271   : > { %698 = vst.msk [vmem:[%s2075_s24 + $0x32] sm:$0x1] %vm575_vm9, %v683_v23  ;;  %v972_v59 = vrot.slane %v965_v50, 5  ;;  %v973_v7 = vrot.slane %v965_v50, 6  ;;  %v974_v21 = vrot.slane %v965_v50, 7 }
 0x272   : > { %699 = vst.msk [vmem:[%s2075_s24 + $0x3a] sm:$0x1] %vm575_vm9, %v684_v1 }
 0x273   : > { %750 = vst.msk [vmem:[%s2075_s24 + $0x3] sm:$0x1] %vm575_vm9, %v733_v16 }
 0x274   : > { %751 = vst.msk [vmem:[%s2075_s24 + $0xb] sm:$0x1] %vm575_vm9, %v736_v24 }
 0x275   : > { %752 = vst.msk [vmem:[%s2075_s24 + $0x13] sm:$0x1] %vm575_vm9, %v737_v62 }
 0x276   : > { %753 = vst.msk [vmem:[%s2075_s24 + $0x1b] sm:$0x1] %vm575_vm9, %v738_v27 }
 0x277   : > { %754 = vst.msk [vmem:[%s2075_s24 + $0x23] sm:$0x1] %vm575_vm9, %v739_v28 }
 0x278   : > { %755 = vst.msk [vmem:[%s2075_s24 + $0x2b] sm:$0x1] %vm575_vm9, %v740_v17 }
 0x279   : > { %756 = vst.msk [vmem:[%s2075_s24 + $0x33] sm:$0x1] %vm575_vm9, %v741_v20 }
 0x27a   : > { %757 = vst.msk [vmem:[%s2075_s24 + $0x3b] sm:$0x1] %vm575_vm9, %v742_v31 }
 0x27b   : > { %808 = vst.msk [vmem:[%s2075_s24 + $0x4] sm:$0x1] %vm575_vm9, %v791_v19 }
 0x27c   : > { %809 = vst.msk [vmem:[%s2075_s24 + $0xc] sm:$0x1] %vm575_vm9, %v794_v32 }
 0x27d   : > { %810 = vst.msk [vmem:[%s2075_s24 + $0x14] sm:$0x1] %vm575_vm9, %v795_v0 }
 0x27e   : > { %811 = vst.msk [vmem:[%s2075_s24 + $0x1c] sm:$0x1] %vm575_vm9, %v796_v53 }
 0x27f   : > { %812 = vst.msk [vmem:[%s2075_s24 + $0x24] sm:$0x1] %vm575_vm9, %v797_v34 }
 0x280   : > { %813 = vst.msk [vmem:[%s2075_s24 + $0x2c] sm:$0x1] %vm575_vm9, %v798_v36 }
 0x281   : > { %814 = vst.msk [vmem:[%s2075_s24 + $0x34] sm:$0x1] %vm575_vm9, %v799_v40 }
 0x282   : > { %815 = vst.msk [vmem:[%s2075_s24 + $0x3c] sm:$0x1] %vm575_vm9, %v800_v35 }
 0x283   : > { %866 = vst.msk [vmem:[%s2075_s24 + $0x5] sm:$0x1] %vm575_vm9, %v849_v39 }
 0x284   : > { %867 = vst.msk [vmem:[%s2075_s24 + $0xd] sm:$0x1] %vm575_vm9, %v852_v25 }
 0x285   : > { %868 = vst.msk [vmem:[%s2075_s24 + $0x15] sm:$0x1] %vm575_vm9, %v853_v42 }
 0x286   : > { %869 = vst.msk [vmem:[%s2075_s24 + $0x1d] sm:$0x1] %vm575_vm9, %v854_v6 }
 0x287   : > { %870 = vst.msk [vmem:[%s2075_s24 + $0x25] sm:$0x1] %vm575_vm9, %v855_v44 }
 0x288   : > { %871 = vst.msk [vmem:[%s2075_s24 + $0x2d] sm:$0x1] %vm575_vm9, %v856_v47 }
 0x289   : > { %872 = vst.msk [vmem:[%s2075_s24 + $0x35] sm:$0x1] %vm575_vm9, %v857_v10 }
 0x28a   : > { %873 = vst.msk [vmem:[%s2075_s24 + $0x3d] sm:$0x1] %vm575_vm9, %v858_v37 }
 0x28b   : > { %924 = vst.msk [vmem:[%s2075_s24 + $0x6] sm:$0x1] %vm575_vm9, %v907_v48 }
 0x28c   : > { %925 = vst.msk [vmem:[%s2075_s24 + $0xe] sm:$0x1] %vm575_vm9, %v910_v54 }
 0x28d   : > { %926 = vst.msk [vmem:[%s2075_s24 + $0x16] sm:$0x1] %vm575_vm9, %v911_v41 }
 0x28e   : > { %927 = vst.msk [vmem:[%s2075_s24 + $0x1e] sm:$0x1] %vm575_vm9, %v912_v49 }
 0x28f   : > { %928 = vst.msk [vmem:[%s2075_s24 + $0x26] sm:$0x1] %vm575_vm9, %v913_v29 }
 0x290   : > { %929 = vst.msk [vmem:[%s2075_s24 + $0x2e] sm:$0x1] %vm575_vm9, %v914_v18 }
 0x291   : > { %930 = vst.msk [vmem:[%s2075_s24 + $0x36] sm:$0x1] %vm575_vm9, %v915_v52 }
 0x292   : > { %931 = vst.msk [vmem:[%s2075_s24 + $0x3e] sm:$0x1] %vm575_vm9, %v916_v55 }
 0x293   : > { %982 = vst.msk [vmem:[%s2075_s24 + $0x7] sm:$0x1] %vm575_vm9, %v965_v50 }
 0x294   : > { %983 = vst.msk [vmem:[%s2075_s24 + $0xf] sm:$0x1] %vm575_vm9, %v968_v56 }
 0x295   : > { %984 = vst.msk [vmem:[%s2075_s24 + $0x17] sm:$0x1] %vm575_vm9, %v969_v51 }
 0x296   : > { %985 = vst.msk [vmem:[%s2075_s24 + $0x1f] sm:$0x1] %vm575_vm9, %v970_v46 }
 0x297   : > { %986 = vst.msk [vmem:[%s2075_s24 + $0x27] sm:$0x1] %vm575_vm9, %v971_v58 }
 0x298   : > { %987 = vst.msk [vmem:[%s2075_s24 + $0x2f] sm:$0x1] %vm575_vm9, %v972_v59 }
 0x299   : > { %988 = vst.msk [vmem:[%s2075_s24 + $0x37] sm:$0x1] %vm575_vm9, %v973_v7 }
 0x29a   : > { %989 = vst.msk [vmem:[%s2075_s24 + $0x3f] sm:$0x1] %vm575_vm9, %v974_v21 }
 0x29b   : > { %1291 = shalt.err (!%p1288_p7)
}
 0x29c   : > { %s1341_s0 = smov 128   ;;  %s1342_s20 = smov 8  }
 0x29d   : > { %1131 = dma.vmem_to_hbm [thread:$0]  (%p1418_p11), %s1004_s19, 1024, %s1006_s8, %s991_s10, %s1341_s0, %s1341_s0, %s1342_s20  }
 0x29e PF: > { %s1020_s22 = sand.u32 1, %s1322_s15   ;;  %p1141_p0 = pnand %p1106_p9, %p1422_p12 }
 0x29f   : > { %s1021_s25 = scalar_lea.sflag [#allocation4], %s1020_s22 }
 0x2a0   : > { %p1142_p8 = pneg %p1141_p0 }
 0x2a2   : > { %1317 = dma.done.wait (%p1142_p8), %s1021_s25, 1024  }
 0x2a3   : > { %1319 = vsyncadd (%p1142_p8), %s1021_s25, 4294966272  ;;  %s2265_s7 = sld [smem:[#allocation11_spill]]  ;;  %p20_p10 = scmp.ge.s32.totalorder %s1393_s21, 4  }
 0x2a4   : > { %s2266_s17 = sld [smem:[#allocation12_spill]]  ;;  %s2267_s15 = smov %s1326_s16 }
 0x2a5   : > { %s2269_s18 = smov %s1393_s21  ;;  %22 = sbr.rel (!%p20_p10) target bundleno = 9 (0x9), region = 94 }
 0x2a9   : > { %s2268_s16 = smov %s2265_s7 }
 0x2aa   :  { %1027 = vsyncpa [#allocation3], 1 }
 0x2ab   :  { %1029 = vsyncpa [#allocation3 + $0x1], 1 }
 0x2ac   :  { %1030 = vsyncpa [#allocation6], 1 }
 0x2ad   :  { %1032 = vsyncpa [#allocation6 + $0x1], 1 }
 0x2ae   :  { %1033 = vsyncpa [#allocation4], 1 }
 0x2af   :  { %1035 = vsyncpa [#allocation4 + $0x1], 1 }

</bundles_post_ra>
